<compile_context>
chip_gen: v6e
topology: v6e:2x2x1
jax: 0.10.0
libtpu: 0.0.40
codegen_flags: <defaults>
</compile_context>

<pallas_src>
import jax
import jax.numpy as jnp
from jax.experimental import pallas as pl
from jax.experimental.pallas import tpu as pltpu

NUM_GROUPS = 12          # len(self.functional_groups)
EMBED_DIM = 48           # must be divisible by NUM_GROUPS (PyTorch code assumes this)
GROUP_DIM = EMBED_DIM // NUM_GROUPS
BATCH = 2


def _round_up(x, m):
    return (x + m - 1) // m * m


def fg_encoder_kernel(counts_ref, w_ref, b_ref, out_ref):
    # counts_ref: [TB, G]   functional-group counts tile
    # w_ref:      [G,  D]   fused (block-diag @ aggregator) weight
    # b_ref:      [1,  D]   fused bias
    # out_ref:    [TB, D]   output tile (ragged last tile is masked on writeback)
    out = jnp.dot(counts_ref[...], w_ref[...],
                  preferred_element_type=jnp.float32) + b_ref[...]
    # TODO(synk): Dropout(0.1) omitted — forward implemented in eval mode (identity).
    out_ref[...] = out.astype(out_ref.dtype)


def fuse_params(w_fg_block, b_fg_flat, w_agg, b_agg):
    """Fold the two linears into one [G, D] matmul + [1, D] bias (no padding).

    out = (c @ W_fg + b_fg) @ W_agg + b_agg
        =  c @ (W_fg @ W_agg) + (b_fg @ W_agg + b_agg)
    Done once in the wrapper (weights are static), never inside the kernel.
    """
    w_fused = jnp.dot(w_fg_block, w_agg)              # [G, D]
    b_fused = jnp.dot(b_fg_flat, w_agg) + b_agg       # [1, D]
    return w_fused.astype(jnp.float32), b_fused.astype(jnp.float32)


def fg_encoder_forward(counts, w_fused, b_fused, *,
                       max_batch_tile=4096, min_grid_steps=2,
                       out_dtype=jnp.float32):
    """counts: [B, NUM_GROUPS] float32 -> [B, EMBED_DIM] (out_dtype)."""
    B, G = counts.shape
    D = w_fused.shape[1]

    # Batch tile: multiple of 8 (sublane rule), large enough to amortize the
    # ~0.35 us per-grid-step cost, but split into >=min_grid_steps tiles when
    # B allows so the parallel grid axis can shard across v7x's two TCs.
    tile_for_split = _round_up(pl.cdiv(B, min_grid_steps), 8)
    batch_tile = max(8, min(max_batch_tile, tile_for_split))
    grid = pl.cdiv(B, batch_tile)            # ragged last block is fine

    out_itemsize = jnp.dtype(out_dtype).itemsize
    cost = pl.CostEstimate(
        flops=2 * B * G * D,
        transcendentals=0,
        bytes_accessed=(counts.size * counts.dtype.itemsize
                        + w_fused.size * 4 + b_fused.size * 4
                        + B * D * out_itemsize),
    )

    out = pl.pallas_call(
        fg_encoder_kernel,
        out_shape=jax.ShapeDtypeStruct((B, D), out_dtype),
        grid_spec=pl.GridSpec(
            grid=(grid,),
            in_specs=[
                pl.BlockSpec((batch_tile, G), lambda i: (i, 0)),
                # Fused weight/bias: constant index_map -> VMEM-resident
                # across all batch-grid iterations.
                pl.BlockSpec((G, D), lambda i: (0, 0)),
                pl.BlockSpec((1, D), lambda i: (0, 0)),
            ],
            out_specs=pl.BlockSpec((batch_tile, D), lambda i: (i, 0)),
        ),
        compiler_params=pltpu.CompilerParams(
            dimension_semantics=("parallel",)),   # batch rows are independent
        cost_estimate=cost,
    )(counts, w_fused, b_fused)

    return out


def init_params(key):
    """Deterministic synthetic parameters matching the module's shapes."""
    k_wfg, k_bfg, k_wagg, k_bagg = jax.random.split(key, 4)

    # Per-group Linear(1, GROUP_DIM) weights/biases for the 12 groups, packed
    # into a block-diagonal [G, D] matrix and a flat [1, D] bias.
    per_group_w = jax.random.normal(k_wfg, (NUM_GROUPS, GROUP_DIM),
                                    dtype=jnp.float32) * 0.1
    per_group_b = jax.random.normal(k_bfg, (NUM_GROUPS, GROUP_DIM),
                                    dtype=jnp.float32) * 0.1

    w_fg_block = jnp.zeros((NUM_GROUPS, EMBED_DIM), dtype=jnp.float32)
    for g in range(NUM_GROUPS):
        w_fg_block = w_fg_block.at[g, g * GROUP_DIM:(g + 1) * GROUP_DIM].set(
            per_group_w[g])
    b_fg_flat = per_group_b.reshape(1, EMBED_DIM)

    # fg_aggregator: Linear(EMBED_DIM, EMBED_DIM), stored (in, out) for x @ W.
    w_agg = jax.random.normal(k_wagg, (EMBED_DIM, EMBED_DIM),
                              dtype=jnp.float32) * 0.1
    b_agg = jax.random.normal(k_bagg, (1, EMBED_DIM), dtype=jnp.float32) * 0.1
    return w_fg_block, b_fg_flat, w_agg, b_agg


def reference_forward(counts, w_fg_block, b_fg_flat, w_agg, b_agg):
    feats = counts @ w_fg_block + b_fg_flat
    return feats @ w_agg + b_agg


if __name__ == "__main__":
    key = jax.random.PRNGKey(0)
    k_params, k_counts, k_counts2 = jax.random.split(key, 3)

    w_fg_block, b_fg_flat, w_agg, b_agg = init_params(k_params)
    # One-time, wrapper-side algebraic fusion of the two linears.
    w_fused, b_fused = fuse_params(w_fg_block, b_fg_flat, w_agg, b_agg)

    # Functional-group counts per molecule (what identify_functional_groups
    # would produce from RDKit) — small non-negative integers as floats.
    counts = jax.random.randint(k_counts, (BATCH, NUM_GROUPS), 0, 5).astype(
        jnp.float32)

    out = fg_encoder_forward(counts, w_fused, b_fused)
    out = jax.block_until_ready(out)
    ref = reference_forward(counts, w_fg_block, b_fg_flat, w_agg, b_agg)
    assert out.shape == (BATCH, EMBED_DIM)
    assert jnp.allclose(out, ref, atol=1e-4, rtol=1e-5), (
        f"max abs err {jnp.max(jnp.abs(out - ref))}")

    # Exercise the multi-tile + ragged-last-block path (review concern):
    # B=20 with max_batch_tile=16 -> grid=2, last block only 4 valid rows.
    B2 = 20
    counts2 = jax.random.randint(k_counts2, (B2, NUM_GROUPS), 0, 5).astype(
        jnp.float32)
    out2 = jax.block_until_ready(
        fg_encoder_forward(counts2, w_fused, b_fused, max_batch_tile=16))
    ref2 = reference_forward(counts2, w_fg_block, b_fg_flat, w_agg, b_agg)
    assert out2.shape == (B2, EMBED_DIM)
    assert jnp.allclose(out2, ref2, atol=1e-4, rtol=1e-5), (
        f"max abs err {jnp.max(jnp.abs(out2 - ref2))}")

    print("KERNEL_OK")
</pallas_src>

<mosaic_0001>
module attributes {stable_mosaic.version = 11 : i64} {
  func.func @fg_encoder_kernel(%arg0: i32, %arg1: memref<8x12xf32, #tpu.memory_space<vmem>>, %arg2: memref<12x48xf32, #tpu.memory_space<vmem>>, %arg3: memref<1x48xf32, #tpu.memory_space<vmem>>, %arg4: memref<8x48xf32, #tpu.memory_space<vmem>>) attributes {dimension_semantics = [#tpu.dimension_semantics<parallel>], iteration_bounds = array<i64: 1>, scalar_prefetch = 0 : i64, scratch_operands = 0 : i64, tpu.core_type = #tpu.core_type<tc>, window_params = [{transform_indices = @transform_0, window_bounds = array<i64: 8, 12>}, {pipeline_mode = #tpu.pipeline_mode<synchronous>, transform_indices = @transform_1, window_bounds = array<i64: 12, 48>}, {pipeline_mode = #tpu.pipeline_mode<synchronous>, transform_indices = @transform_2, window_bounds = array<i64: 1, 48>}, {transform_indices = @transform_3, window_bounds = array<i64: 8, 48>}]} {
    %c0 = arith.constant 0 : index
    %c0_0 = arith.constant 0 : index
    %0 = vector.load %arg1[%c0, %c0_0] : memref<8x12xf32, #tpu.memory_space<vmem>>, vector<8x12xf32>
    %c0_1 = arith.constant 0 : index
    %c0_2 = arith.constant 0 : index
    %1 = vector.load %arg2[%c0_1, %c0_2] : memref<12x48xf32, #tpu.memory_space<vmem>>, vector<12x48xf32>
    %cst = arith.constant dense<0.000000e+00> : vector<8x48xf32>
    %2 = tpu.matmul %0, %1, %cst {dimension_numbers = #tpu.dot_dimension_numbers<[1], [0], [0], [1], [0, 0, 1, 1], [], []>} : vector<8x12xf32>, vector<12x48xf32>, vector<8x48xf32> -> vector<8x48xf32>
    %c0_3 = arith.constant 0 : index
    %c0_4 = arith.constant 0 : index
    %3 = vector.load %arg3[%c0_3, %c0_4] : memref<1x48xf32, #tpu.memory_space<vmem>>, vector<1x48xf32>
    %4 = vector.broadcast %3 : vector<1x48xf32> to vector<8x48xf32>
    %5 = arith.addf %2, %4 : vector<8x48xf32>
    %c0_5 = arith.constant 0 : index
    %c0_6 = arith.constant 0 : index
    %6 = vector.load %arg4[%c0_5, %c0_6] : memref<8x48xf32, #tpu.memory_space<vmem>>, vector<8x48xf32>
    tpu.vector_store %arg4[%c0_5, %c0_6], %5 {strides = array<i32>} : memref<8x48xf32, #tpu.memory_space<vmem>>, vector<8x48xf32>,
    return
  }
  func.func @transform_0(%arg0: i32) -> (i32, i32) {
    %c0_i32 = arith.constant 0 : i32
    %c0_i32_0 = arith.constant 0 : i32
    return %arg0, %c0_i32 : i32, i32
  }
  func.func @transform_1(%arg0: i32) -> (i32, i32) {
    %c0_i32 = arith.constant 0 : i32
    %c0_i32_0 = arith.constant 0 : i32
    %c0_i32_1 = arith.constant 0 : i32
    return %c0_i32, %c0_i32_0 : i32, i32
  }
  func.func @transform_2(%arg0: i32) -> (i32, i32) {
    %c0_i32 = arith.constant 0 : i32
    %c0_i32_0 = arith.constant 0 : i32
    %c0_i32_1 = arith.constant 0 : i32
    return %c0_i32, %c0_i32_0 : i32, i32
  }
  func.func @transform_3(%arg0: i32) -> (i32, i32) {
    %c0_i32 = arith.constant 0 : i32
    %c0_i32_0 = arith.constant 0 : i32
    return %arg0, %c0_i32 : i32, i32
  }
}

</mosaic_0001>

<bundles_post_ra>
// kernel: tpu_custom_call.1
= control target key start
LH: loop header
LB: loop body
LE: loop exit
PB: predicated region body
PF: predicated region fallthrough
CT: control target
= control target key end

     0   :  { %8 = vsyncpa [#allocation3], 0  ;;  %s286_s0 = inlined_call_operand.hbm [shape: f32[2,12], index: 0, kind: input, shape index: {}]   ;;  %s287_s1 = inlined_call_operand.hbm [shape: f32[12,48], index: 1, kind: input, shape index: {}]   ;;  %s288_s2 = inlined_call_operand.vmem [shape: f32[1,48], index: 2, kind: input, shape index: {}]   ;;  %s289_s3 = inlined_call_operand.hbm [shape: f32[2,48], index: 3, kind: output, shape index: {}]  }
   0x1   :  { %9 = vsyncpa [#allocation6], 0 }
   0x2   :  { %10 = vsyncpa [#allocation4], 0 }
   0x3   :  { %15 = vsyncadd [#allocation3], 96  ;;  %s239_s12 = smov [#allocation2]  }
   0x4   :  { %s16_s13 = sshll.u32 %s239_s12, 4  ;;  %s17_s13 = int_to_ptr.vmem [resolvable:$true] %s16_s13 }
   0x5   :  { %s181_s14 = scalar_lea.vmem %s17_s13, 32  ;;  %s185_s15 = scalar_lea.vmem %s17_s13, 128 }
   0x6   :  { %p182_p0 = scmp.ne.s32.totalorder %s17_s13, %s181_s14  ;;  %p186_p1 = scmp.lt.s32.totalorder %s17_s13, %s17_s13 }
   0x7   :  { %p187_p2 = scmp.lt.s32.totalorder %s185_s15, %s181_s14 }
   0x9   :  { %p188_p3 = por %p187_p2, %p186_p1 }
   0xb   :  { %p189_p4 = pnand %p188_p3, %p182_p0 }
   0xd   :  { %192 = shalt.err (!%p189_p4)
}
   0xe   :  { %s240_s16 = smov 32   ;;  %s241_s17 = smov 2  }
   0xf   :  { %22 = dma.hbm_to_vmem [thread:$0]  %s286_s0, 32, %s17_s13, [#allocation3], %s240_s16, %s240_s16, %s241_s17  }
  0x10   :  { %s242_s20 = smov [#allocation5]  }
  0x11   :  { %s28_s21 = sshll.u32 %s242_s20, 4  ;;  %s29_s21 = int_to_ptr.vmem [resolvable:$true] %s28_s21 }
  0x12   :  { %s201_s22 = scalar_lea.vmem %s29_s21, 256  ;;  %p206_p6 = scmp.lt.s32.totalorder %s29_s21, %s29_s21 }
  0x13   :  { %p202_p5 = scmp.ne.s32.totalorder %s29_s21, %s201_s22  ;;  %p207_p7 = scmp.lt.s32.totalorder %s201_s22, %s201_s22 }
  0x15   :  { %p208_p8 = por %p207_p7, %p206_p6 }
  0x17   :  { %p209_p9 = pnand %p208_p8, %p202_p5 }
  0x19   :  { %212 = shalt.err (!%p209_p9)
}
  0x1a   :  { %s243_s23 = smov 128   ;;  %s244_s24 = smov 8  }
  0x1b   :  { %34 = dma.hbm_to_vmem [thread:$0]  %s287_s1, 256, %s29_s21, [#allocation6], %s243_s23, %s243_s23, %s244_s24  }
  0x1c   :  { %233 = dma.done.wait [#allocation3], 128  }
  0x1d   :  { %234 = vsyncadd [#allocation3], 4294967168 }
  0x1e   :  { %235 = dma.done.wait [#allocation6], 256  }
  0x1f   :  { %236 = vsyncadd [#allocation6], 4294967040  ;;  %v245_v0 = vmov 0.0   ;;  %vm246_vm0 = vmmov 0   ;;  %vm57_vm1 = vcmask 1043456   ;;  %v44_v2 = vld [vmem:[#allocation5] sm:$0xff] }
  0x20   :  { %157 = vmatprep.subr.mxu0 %v245_v0  ;;  %161 = vmatprep.mubr.msk.f32.mxu0 %vm246_vm0, %v245_v0  ;;  %v45_v1 = vld [vmem:[#allocation5 + $0x8] sm:$0xf]  ;;  %v43_v3 = vld [vmem:[#allocation2] sm:$0xff]  ;;  %vm53_vm2 = vcmask 97280   ;;  %vm131_vm3 = vcmask 392192  }
  0x21   :  { %158 = vmatpush3.msk.msra.mxu0 %vm57_vm1, %v45_v1  ;;  %v151_v4 = vld [vmem:[%s288_s2] ss:$0 sm:$0xff] }
  0x22   :  { %159 = vmatprep.subr.mxu0 %v245_v0 }
  0x23   :  { %160 = vmatpush3.msra.mxu0 %v44_v2 }
  0x24   :  { %162 = vmatmul.mubr.msk.f32.vlgmr.msra.gmra.mxu0 %vm53_vm2, %v43_v3 }
  0xe4   :  { %v127_v5 = vpop.f32.mrf.mxu0 }
  0xe5   :  { %v128_v6 = vadd.f32 %v151_v4, %v127_v5 }
  0xe6   :  { %v163_v7 = vpop.f32.mrf.mxu0 }
  0xe7   :  { %132 = vst.msk [vmem:[#allocation7] sm:$0xff] %vm131_vm3, %v128_v6 }
  0xe8   :  { %137 = vsyncadd [#allocation4], 96  ;;  %s247_s1 = smov [#allocation7]  }
  0xe9   :  { %s138_s28 = sshll.u32 %s247_s1, 4  ;;  %s139_s28 = int_to_ptr.vmem [resolvable:$true] %s138_s28 }
  0xea   :  { %s213_s29 = scalar_lea.vmem %s139_s28, 32  ;;  %s217_s30 = scalar_lea.vmem %s139_s28, 128 }
  0xeb   :  { %p214_p10 = scmp.ne.s32.totalorder %s139_s28, %s213_s29  ;;  %p218_p11 = scmp.lt.s32.totalorder %s139_s28, %s139_s28 }
  0xec   :  { %p219_p12 = scmp.lt.s32.totalorder %s217_s30, %s213_s29 }
  0xee   :  { %p220_p13 = por %p219_p12, %p218_p11 }
  0xf0   :  { %p221_p0 = pnand %p220_p13, %p214_p10 }
  0xf2   :  { %224 = shalt.err (!%p221_p0)
}
  0xf3   :  { %144 = dma.vmem_to_hbm [thread:$0]  %s139_s28, 32, %s289_s3, [#allocation4], %s240_s16, %s240_s16, %s241_s17  }
  0xf4   :  { %237 = dma.done.wait [#allocation4], 128  }
  0xf5   :  { %238 = vsyncadd [#allocation4], 4294967168 }
  0xf6   :  { %148 = vsyncpa [#allocation3], 1 }
  0xf7   :  { %149 = vsyncpa [#allocation6], 1 }
  0xf8   :  { %150 = vsyncpa [#allocation4], 1 }

</bundles_post_ra>
